<compile_context>
chip_gen: v7x
topology: tpu7x:2x2x1
jax: 0.10.0
libtpu: 0.0.40
codegen_flags: <defaults>
</compile_context>

<pallas_src>
import jax
import jax.numpy as jnp
from jax.experimental import pallas as pl
from jax.experimental.pallas import tpu as pltpu


# ----------------------------- hyperparameters (AE_Params analogue) -----------------------------
IN_CHANNELS = 2                      # -> hidden_channels = [1] * IN_CHANNELS
HIDDEN_CHANNELS = [1] * IN_CHANNELS  # per-node feature channels stay 1 through the graph convs
NODES = 32                           # MLP width for the parameter mapping
BOTTLENECK = 8
FFN = 32
SKIP = 1
NUM_NODES = 16                       # graph size N
BATCH = 2
LAYER_VEC = [2, NODES, NODES, NODES, NODES, BOTTLENECK]
MAP_STEPS = len(LAYER_VEC) - 1
C = HIDDEN_CHANNELS[-1]              # = 1
N_PARAMS = LAYER_VEC[0]              # = 2

# packed weight-slab slot indices (mapping layers occupy slots 0 .. MAP_STEPS-1)
ENC_FC1 = MAP_STEPS + 0
ENC_FC2 = MAP_STEPS + 1
DEC_FC1 = MAP_STEPS + 2
DEC_FC2 = MAP_STEPS + 3
N_SLAB = MAP_STEPS + 4
SLAB = max(NODES, FFN, NUM_NODES * C, BOTTLENECK, *LAYER_VEC)   # = 32
OUT_W = NUM_NODES * C + 2 * BOTTLENECK                          # packed output width = 32


# ------------------------------------ fused Pallas kernel ------------------------------------

def _net_kernel(adj_t_ref, x_ref, mu_ref,
                conv_ref,                      # SMEM (2*2*IN_CHANNELS,) scalar conv (w,b) table
                w_ref, b_ref,                  # zero-padded weight/bias slabs [9,32,32] / [9,1,32]
                out_ref):                      # packed [B, 32] = [x_rec(16) | z(8) | z_est(8)]
    at = adj_t_ref[...]                        # [N, N]  (A^T)
    h = x_ref[...]                             # [B, N]  (C == 1 flattened)

    # ---- solo_encoder: graph convs, batched as (h @ A^T) so all graphs share one matmul ----
    for k in range(IN_CHANNELS):
        w = conv_ref[2 * k]                    # C=1 conv weight -> scalar VPU mul
        b = conv_ref[2 * k + 1]
        msg = jnp.dot(h, at, preferred_element_type=jnp.float32)
        y = jnp.tanh(msg * w + b)
        if SKIP:
            y = y + h
        h = y

    # ---- encoder FFN -> bottleneck (flatten is identity since C == 1).  z_pad's lanes past
    #      BOTTLENECK are exactly zero (zero-padded weight cols + zero bias). ----
    y1 = jnp.tanh(jnp.dot(h, w_ref[ENC_FC1][:NUM_NODES * C, :],
                          preferred_element_type=jnp.float32) + b_ref[ENC_FC1])
    z_pad = jnp.dot(y1, w_ref[ENC_FC2], preferred_element_type=jnp.float32) + b_ref[ENC_FC2]

    # ---- mapping(parameters): tanh after EVERY layer (reference `idx == steps` never fires).
    #      mu is un-padded [B, 2]; layer 0 uses the sliced [2, NODES] weight block, the rest
    #      run on the uniform zero-padded [NODES, NODES] slab (padded lanes stay 0). ----
    zz = jnp.tanh(jnp.dot(mu_ref[...], w_ref[0][:N_PARAMS, :],
                          preferred_element_type=jnp.float32) + b_ref[0])
    for k in range(1, MAP_STEPS):
        zz = jnp.tanh(jnp.dot(zz, w_ref[k], preferred_element_type=jnp.float32) + b_ref[k])

    # ---- solo_decoder: FFN then graph convs.  z_pad's zero lanes meet zero weight rows, so
    #      feeding the padded bottleneck straight in is exact. ----
    d = jnp.tanh(jnp.dot(z_pad, w_ref[DEC_FC1], preferred_element_type=jnp.float32)
                 + b_ref[DEC_FC1])
    d = jnp.tanh(jnp.dot(d, w_ref[DEC_FC2], preferred_element_type=jnp.float32)
                 + b_ref[DEC_FC2])
    d = d[:, :NUM_NODES * C]

    for i in range(IN_CHANNELS):
        last = i == IN_CHANNELS - 1
        w = conv_ref[2 * IN_CHANNELS + 2 * i]
        b = conv_ref[2 * IN_CHANNELS + 2 * i + 1]
        msg = jnp.dot(d, at, preferred_element_type=jnp.float32)
        y = msg * w + b
        if not last:
            # TODO(synk): activation/skip on the final decoder conv follows gca.py
            # (unavailable); last conv stays linear with no skip to emit the raw reconstruction.
            y = jnp.tanh(y)
            if SKIP:
                y = y + d
        d = y

    # single lane-contiguous packed output: one store + one writeback DMA
    out_ref[...] = jnp.concatenate([d, z_pad[:, :BOTTLENECK], zz[:, :BOTTLENECK]], axis=-1)


def net_forward(params, x, mu, adj):
    B, N, Cc = x.shape
    # Layout plumbing (outside the kernel): batch-major node features and transposed adjacency
    # so the per-graph conv A @ x_b becomes one batched matmul h @ A^T.
    h0 = x.reshape(B, N * Cc)
    at = jnp.transpose(adj)

    vmem = pl.BlockSpec(memory_space=pltpu.MemorySpace.VMEM)
    smem = pl.BlockSpec(memory_space=pltpu.MemorySpace.SMEM)

    packed = pl.pallas_call(
        _net_kernel,
        out_shape=jax.ShapeDtypeStruct((B, OUT_W), jnp.float32),
        in_specs=[vmem, vmem, vmem, smem, vmem, vmem],
        out_specs=vmem,
        compiler_params=pltpu.CompilerParams(vmem_limit_bytes=4 * 1024 * 1024),
    )(at, h0, mu, params["conv_wb"], params["w_slab"], params["b_slab"])

    x_rec = packed[:, :N * Cc].reshape(B, N, Cc)
    z = packed[:, N * Cc:N * Cc + BOTTLENECK]
    z_est = packed[:, N * Cc + BOTTLENECK:]
    return x_rec, z, z_est


# --------------------------------- parameter construction ---------------------------------

def init_linear(key, din, dout):
    k1, k2 = jax.random.split(key)
    bound = 1.0 / (din ** 0.5)
    w = jax.random.uniform(k1, (din, dout), jnp.float32, -bound, bound)
    b = jax.random.uniform(k2, (1, dout), jnp.float32, -bound, bound)
    return w, b


def init_params(key):
    keys = jax.random.split(key, 16)
    params = {}

    # graph-conv weights: C == 1, so each layer is just a (w, b) scalar pair -> tiny 1-D SMEM
    # table (layout: [enc_w0, enc_b0, enc_w1, enc_b1, dec_w0, dec_b0, dec_w1, dec_b1])
    enc_convs = [init_linear(keys[i], C, C) for i in range(IN_CHANNELS)]
    dec_convs = [init_linear(keys[8 + i], C, C) for i in range(IN_CHANNELS)]
    flat = []
    for (w, b) in enc_convs + dec_convs:
        flat += [w[0, 0], b[0, 0]]
    params["conv_wb"] = jnp.array(flat, jnp.float32)                 # shape (8,)

    # all dense layers stacked into one zero-padded weight slab + one bias slab
    layers = {}
    for k in range(MAP_STEPS):
        layers[k] = init_linear(keys[10 + k], LAYER_VEC[k], LAYER_VEC[k + 1])
    layers[ENC_FC1] = init_linear(keys[4], NUM_NODES * C, FFN)
    layers[ENC_FC2] = init_linear(keys[5], FFN, BOTTLENECK)
    layers[DEC_FC1] = init_linear(keys[6], BOTTLENECK, FFN)
    layers[DEC_FC2] = init_linear(keys[7], FFN, NUM_NODES * C)

    w_slab = jnp.zeros((N_SLAB, SLAB, SLAB), jnp.float32)
    b_slab = jnp.zeros((N_SLAB, 1, SLAB), jnp.float32)
    for idx, (w, b) in layers.items():
        w_slab = w_slab.at[idx, :w.shape[0], :w.shape[1]].set(w)
        b_slab = b_slab.at[idx, :, :b.shape[1]].set(b)
    params["w_slab"] = w_slab
    params["b_slab"] = b_slab

    # the kernel's padded-lane-inert math relies on the padding being exactly zero
    assert float(jnp.abs(w_slab[ENC_FC2, :, BOTTLENECK:]).max()) == 0.0
    assert float(jnp.abs(b_slab[ENC_FC2, :, BOTTLENECK:]).max()) == 0.0
    assert float(jnp.abs(w_slab[DEC_FC1, BOTTLENECK:, :]).max()) == 0.0
    assert float(jnp.abs(b_slab[MAP_STEPS - 1, :, BOTTLENECK:]).max()) == 0.0
    assert float(jnp.abs(w_slab[MAP_STEPS - 1, :, BOTTLENECK:]).max()) == 0.0
    return params


def make_adjacency(n):
    # deterministic ring graph with self-loops, row-normalized
    idx = jnp.arange(n)
    A = jnp.zeros((n, n), jnp.float32)
    A = A.at[idx, idx].set(1.0)
    A = A.at[idx, (idx + 1) % n].set(1.0)
    A = A.at[idx, (idx - 1) % n].set(1.0)
    A = A / A.sum(axis=1, keepdims=True)
    return A


# ------------------------------ pure-JAX reference (correctness) ------------------------------

def net_forward_ref(params, x, mu, adj):
    hi = jax.lax.Precision.HIGHEST
    B, N, Cc = x.shape
    at = adj.T
    cw = params["conv_wb"]
    W, Bb = params["w_slab"], params["b_slab"]

    h = x.reshape(B, N * Cc)
    for k in range(IN_CHANNELS):
        y = jnp.tanh(jnp.dot(h, at, precision=hi) * cw[2 * k] + cw[2 * k + 1])
        if SKIP:
            y = y + h
        h = y

    y1 = jnp.tanh(jnp.dot(h, W[ENC_FC1, :N * Cc, :FFN], precision=hi) + Bb[ENC_FC1, :, :FFN])
    z = jnp.dot(y1, W[ENC_FC2, :FFN, :BOTTLENECK], precision=hi) + Bb[ENC_FC2, :, :BOTTLENECK]

    zz = mu
    for k in range(MAP_STEPS):
        din, dout = LAYER_VEC[k], LAYER_VEC[k + 1]
        zz = jnp.tanh(jnp.dot(zz, W[k, :din, :dout], precision=hi) + Bb[k, :, :dout])
    z_est = zz

    d = jnp.tanh(jnp.dot(z, W[DEC_FC1, :BOTTLENECK, :FFN], precision=hi) + Bb[DEC_FC1, :, :FFN])
    d = jnp.tanh(jnp.dot(d, W[DEC_FC2, :FFN, :N * Cc], precision=hi) + Bb[DEC_FC2, :, :N * Cc])
    for i in range(IN_CHANNELS):
        last = i == IN_CHANNELS - 1
        w = cw[2 * IN_CHANNELS + 2 * i]
        b = cw[2 * IN_CHANNELS + 2 * i + 1]
        y = jnp.dot(d, at, precision=hi) * w + b
        if not last:
            y = jnp.tanh(y)
            if SKIP:
                y = y + d
        d = y
    return d.reshape(B, N, Cc), z, z_est


# ----------------------------------------- main -----------------------------------------

if __name__ == "__main__":
    key = jax.random.PRNGKey(0)
    k_par, k_x, k_mu = jax.random.split(key, 3)

    params = init_params(k_par)
    x = jax.random.normal(k_x, (BATCH, NUM_NODES, C), jnp.float32)   # graph node features
    mu = jax.random.normal(k_mu, (BATCH, 2), jnp.float32)            # PDE parameters
    adj = make_adjacency(NUM_NODES)

    fwd = jax.jit(net_forward)
    x_rec, z, z_est = fwd(params, x, mu, adj)
    jax.block_until_ready((x_rec, z, z_est))

    assert x_rec.shape == (BATCH, NUM_NODES, C)
    assert z.shape == (BATCH, BOTTLENECK)
    assert z_est.shape == (BATCH, BOTTLENECK)

    # correctness check against the pure-JAX reference (uses un-padded weight slices, so it
    # also verifies the zero-padded slab scheme is mathematically inert)
    xr_ref, zr_ref, ze_ref = net_forward_ref(params, x, mu, adj)
    assert jnp.allclose(x_rec, xr_ref, rtol=1e-3, atol=1e-3)
    assert jnp.allclose(z, zr_ref, rtol=1e-3, atol=1e-3)
    assert jnp.allclose(z_est, ze_ref, rtol=1e-3, atol=1e-3)

    print("KERNEL_OK")
</pallas_src>

<mosaic_0001>
module attributes {stable_mosaic.version = 11 : i64} {
  func.func @_net_kernel(%arg0: memref<16x16xf32, #tpu.memory_space<vmem>>, %arg1: memref<2x16xf32, #tpu.memory_space<vmem>>, %arg2: memref<2x2xf32, #tpu.memory_space<vmem>>, %arg3: memref<8xf32, #tpu.memory_space<smem>>, %arg4: memref<9x32x32xf32, #tpu.memory_space<vmem>>, %arg5: memref<9x1x32xf32, #tpu.memory_space<vmem>>, %arg6: memref<2x32xf32, #tpu.memory_space<vmem>>) attributes {dimension_semantics = [], scalar_prefetch = 0 : i64, scratch_operands = 0 : i64, tpu.core_type = #tpu.core_type<tc>} {
    %c0 = arith.constant 0 : index
    %c0_0 = arith.constant 0 : index
    %0 = vector.load %arg0[%c0, %c0_0] : memref<16x16xf32, #tpu.memory_space<vmem>>, vector<16x16xf32>
    %c0_1 = arith.constant 0 : index
    %c0_2 = arith.constant 0 : index
    %1 = vector.load %arg1[%c0_1, %c0_2] : memref<2x16xf32, #tpu.memory_space<vmem>>, vector<2x16xf32>
    %c0_3 = arith.constant 0 : index
    %2 = memref.load %arg3[%c0_3] : memref<8xf32, #tpu.memory_space<smem>>
    %c1 = arith.constant 1 : index
    %3 = memref.load %arg3[%c1] : memref<8xf32, #tpu.memory_space<smem>>
    %cst = arith.constant dense<0.000000e+00> : vector<2x16xf32>
    %4 = tpu.matmul %1, %0, %cst {dimension_numbers = #tpu.dot_dimension_numbers<[1], [0], [0], [1], [0, 0, 1, 1], [], []>} : vector<2x16xf32>, vector<16x16xf32>, vector<2x16xf32> -> vector<2x16xf32>
    %5 = vector.broadcast %2 : f32 to vector<2x16xf32>
    %6 = arith.mulf %4, %5 : vector<2x16xf32>
    %7 = vector.broadcast %3 : f32 to vector<2x16xf32>
    %8 = arith.addf %6, %7 : vector<2x16xf32>
    %9 = math.tanh %8 : vector<2x16xf32>
    %10 = arith.addf %9, %1 : vector<2x16xf32>
    %c2 = arith.constant 2 : index
    %11 = memref.load %arg3[%c2] : memref<8xf32, #tpu.memory_space<smem>>
    %c3 = arith.constant 3 : index
    %12 = memref.load %arg3[%c3] : memref<8xf32, #tpu.memory_space<smem>>
    %cst_4 = arith.constant dense<0.000000e+00> : vector<2x16xf32>
    %13 = tpu.matmul %10, %0, %cst_4 {dimension_numbers = #tpu.dot_dimension_numbers<[1], [0], [0], [1], [0, 0, 1, 1], [], []>} : vector<2x16xf32>, vector<16x16xf32>, vector<2x16xf32> -> vector<2x16xf32>
    %14 = vector.broadcast %11 : f32 to vector<2x16xf32>
    %15 = arith.mulf %13, %14 : vector<2x16xf32>
    %16 = vector.broadcast %12 : f32 to vector<2x16xf32>
    %17 = arith.addf %15, %16 : vector<2x16xf32>
    %18 = math.tanh %17 : vector<2x16xf32>
    %19 = arith.addf %18, %10 : vector<2x16xf32>
    %c5 = arith.constant 5 : index
    %c0_5 = arith.constant 0 : index
    %c0_6 = arith.constant 0 : index
    %20 = vector.load %arg4[%c5, %c0_5, %c0_6] : memref<9x32x32xf32, #tpu.memory_space<vmem>>, vector<1x32x32xf32>
    %21 = vector.shape_cast %20 : vector<1x32x32xf32> to vector<32x32xf32>
    %22 = vector.extract_strided_slice %21 {offsets = [0, 0], sizes = [16, 32], strides = [1, 1]} : vector<32x32xf32> to vector<16x32xf32>
    %cst_7 = arith.constant dense<0.000000e+00> : vector<2x32xf32>
    %23 = tpu.matmul %19, %22, %cst_7 {dimension_numbers = #tpu.dot_dimension_numbers<[1], [0], [0], [1], [0, 0, 1, 1], [], []>} : vector<2x16xf32>, vector<16x32xf32>, vector<2x32xf32> -> vector<2x32xf32>
    %c5_8 = arith.constant 5 : index
    %c0_9 = arith.constant 0 : index
    %c0_10 = arith.constant 0 : index
    %24 = vector.load %arg5[%c5_8, %c0_9, %c0_10] : memref<9x1x32xf32, #tpu.memory_space<vmem>>, vector<1x1x32xf32>
    %25 = vector.shape_cast %24 : vector<1x1x32xf32> to vector<1x32xf32>
    %26 = vector.broadcast %25 : vector<1x32xf32> to vector<2x32xf32>
    %27 = arith.addf %23, %26 : vector<2x32xf32>
    %28 = math.tanh %27 : vector<2x32xf32>
    %c6 = arith.constant 6 : index
    %c0_11 = arith.constant 0 : index
    %c0_12 = arith.constant 0 : index
    %29 = vector.load %arg4[%c6, %c0_11, %c0_12] : memref<9x32x32xf32, #tpu.memory_space<vmem>>, vector<1x32x32xf32>
    %30 = vector.shape_cast %29 : vector<1x32x32xf32> to vector<32x32xf32>
    %cst_13 = arith.constant dense<0.000000e+00> : vector<2x32xf32>
    %31 = tpu.matmul %28, %30, %cst_13 {dimension_numbers = #tpu.dot_dimension_numbers<[1], [0], [0], [1], [0, 0, 1, 1], [], []>} : vector<2x32xf32>, vector<32x32xf32>, vector<2x32xf32> -> vector<2x32xf32>
    %c6_14 = arith.constant 6 : index
    %c0_15 = arith.constant 0 : index
    %c0_16 = arith.constant 0 : index
    %32 = vector.load %arg5[%c6_14, %c0_15, %c0_16] : memref<9x1x32xf32, #tpu.memory_space<vmem>>, vector<1x1x32xf32>
    %33 = vector.shape_cast %32 : vector<1x1x32xf32> to vector<1x32xf32>
    %34 = vector.broadcast %33 : vector<1x32xf32> to vector<2x32xf32>
    %35 = arith.addf %31, %34 : vector<2x32xf32>
    %c0_17 = arith.constant 0 : index
    %c0_18 = arith.constant 0 : index
    %36 = vector.load %arg2[%c0_17, %c0_18] : memref<2x2xf32, #tpu.memory_space<vmem>>, vector<2x2xf32>
    %c0_19 = arith.constant 0 : index
    %c0_20 = arith.constant 0 : index
    %c0_21 = arith.constant 0 : index
    %37 = vector.load %arg4[%c0_19, %c0_20, %c0_21] : memref<9x32x32xf32, #tpu.memory_space<vmem>>, vector<1x32x32xf32>
    %38 = vector.shape_cast %37 : vector<1x32x32xf32> to vector<32x32xf32>
    %39 = vector.extract_strided_slice %38 {offsets = [0, 0], sizes = [2, 32], strides = [1, 1]} : vector<32x32xf32> to vector<2x32xf32>
    %cst_22 = arith.constant dense<0.000000e+00> : vector<2x32xf32>
    %40 = tpu.matmul %36, %39, %cst_22 {dimension_numbers = #tpu.dot_dimension_numbers<[1], [0], [0], [1], [0, 0, 1, 1], [], []>} : vector<2x2xf32>, vector<2x32xf32>, vector<2x32xf32> -> vector<2x32xf32>
    %c0_23 = arith.constant 0 : index
    %c0_24 = arith.constant 0 : index
    %c0_25 = arith.constant 0 : index
    %41 = vector.load %arg5[%c0_23, %c0_24, %c0_25] : memref<9x1x32xf32, #tpu.memory_space<vmem>>, vector<1x1x32xf32>
    %42 = vector.shape_cast %41 : vector<1x1x32xf32> to vector<1x32xf32>
    %43 = vector.broadcast %42 : vector<1x32xf32> to vector<2x32xf32>
    %44 = arith.addf %40, %43 : vector<2x32xf32>
    %45 = math.tanh %44 : vector<2x32xf32>
    %c1_26 = arith.constant 1 : index
    %c0_27 = arith.constant 0 : index
    %c0_28 = arith.constant 0 : index
    %46 = vector.load %arg4[%c1_26, %c0_27, %c0_28] : memref<9x32x32xf32, #tpu.memory_space<vmem>>, vector<1x32x32xf32>
    %47 = vector.shape_cast %46 : vector<1x32x32xf32> to vector<32x32xf32>
    %cst_29 = arith.constant dense<0.000000e+00> : vector<2x32xf32>
    %48 = tpu.matmul %45, %47, %cst_29 {dimension_numbers = #tpu.dot_dimension_numbers<[1], [0], [0], [1], [0, 0, 1, 1], [], []>} : vector<2x32xf32>, vector<32x32xf32>, vector<2x32xf32> -> vector<2x32xf32>
    %c1_30 = arith.constant 1 : index
    %c0_31 = arith.constant 0 : index
    %c0_32 = arith.constant 0 : index
    %49 = vector.load %arg5[%c1_30, %c0_31, %c0_32] : memref<9x1x32xf32, #tpu.memory_space<vmem>>, vector<1x1x32xf32>
    %50 = vector.shape_cast %49 : vector<1x1x32xf32> to vector<1x32xf32>
    %51 = vector.broadcast %50 : vector<1x32xf32> to vector<2x32xf32>
    %52 = arith.addf %48, %51 : vector<2x32xf32>
    %53 = math.tanh %52 : vector<2x32xf32>
    %c2_33 = arith.constant 2 : index
    %c0_34 = arith.constant 0 : index
    %c0_35 = arith.constant 0 : index
    %54 = vector.load %arg4[%c2_33, %c0_34, %c0_35] : memref<9x32x32xf32, #tpu.memory_space<vmem>>, vector<1x32x32xf32>
    %55 = vector.shape_cast %54 : vector<1x32x32xf32> to vector<32x32xf32>
    %cst_36 = arith.constant dense<0.000000e+00> : vector<2x32xf32>
    %56 = tpu.matmul %53, %55, %cst_36 {dimension_numbers = #tpu.dot_dimension_numbers<[1], [0], [0], [1], [0, 0, 1, 1], [], []>} : vector<2x32xf32>, vector<32x32xf32>, vector<2x32xf32> -> vector<2x32xf32>
    %c2_37 = arith.constant 2 : index
    %c0_38 = arith.constant 0 : index
    %c0_39 = arith.constant 0 : index
    %57 = vector.load %arg5[%c2_37, %c0_38, %c0_39] : memref<9x1x32xf32, #tpu.memory_space<vmem>>, vector<1x1x32xf32>
    %58 = vector.shape_cast %57 : vector<1x1x32xf32> to vector<1x32xf32>
    %59 = vector.broadcast %58 : vector<1x32xf32> to vector<2x32xf32>
    %60 = arith.addf %56, %59 : vector<2x32xf32>
    %61 = math.tanh %60 : vector<2x32xf32>
    %c3_40 = arith.constant 3 : index
    %c0_41 = arith.constant 0 : index
    %c0_42 = arith.constant 0 : index
    %62 = vector.load %arg4[%c3_40, %c0_41, %c0_42] : memref<9x32x32xf32, #tpu.memory_space<vmem>>, vector<1x32x32xf32>
    %63 = vector.shape_cast %62 : vector<1x32x32xf32> to vector<32x32xf32>
    %cst_43 = arith.constant dense<0.000000e+00> : vector<2x32xf32>
    %64 = tpu.matmul %61, %63, %cst_43 {dimension_numbers = #tpu.dot_dimension_numbers<[1], [0], [0], [1], [0, 0, 1, 1], [], []>} : vector<2x32xf32>, vector<32x32xf32>, vector<2x32xf32> -> vector<2x32xf32>
    %c3_44 = arith.constant 3 : index
    %c0_45 = arith.constant 0 : index
    %c0_46 = arith.constant 0 : index
    %65 = vector.load %arg5[%c3_44, %c0_45, %c0_46] : memref<9x1x32xf32, #tpu.memory_space<vmem>>, vector<1x1x32xf32>
    %66 = vector.shape_cast %65 : vector<1x1x32xf32> to vector<1x32xf32>
    %67 = vector.broadcast %66 : vector<1x32xf32> to vector<2x32xf32>
    %68 = arith.addf %64, %67 : vector<2x32xf32>
    %69 = math.tanh %68 : vector<2x32xf32>
    %c4 = arith.constant 4 : index
    %c0_47 = arith.constant 0 : index
    %c0_48 = arith.constant 0 : index
    %70 = vector.load %arg4[%c4, %c0_47, %c0_48] : memref<9x32x32xf32, #tpu.memory_space<vmem>>, vector<1x32x32xf32>
    %71 = vector.shape_cast %70 : vector<1x32x32xf32> to vector<32x32xf32>
    %cst_49 = arith.constant dense<0.000000e+00> : vector<2x32xf32>
    %72 = tpu.matmul %69, %71, %cst_49 {dimension_numbers = #tpu.dot_dimension_numbers<[1], [0], [0], [1], [0, 0, 1, 1], [], []>} : vector<2x32xf32>, vector<32x32xf32>, vector<2x32xf32> -> vector<2x32xf32>
    %c4_50 = arith.constant 4 : index
    %c0_51 = arith.constant 0 : index
    %c0_52 = arith.constant 0 : index
    %73 = vector.load %arg5[%c4_50, %c0_51, %c0_52] : memref<9x1x32xf32, #tpu.memory_space<vmem>>, vector<1x1x32xf32>
    %74 = vector.shape_cast %73 : vector<1x1x32xf32> to vector<1x32xf32>
    %75 = vector.broadcast %74 : vector<1x32xf32> to vector<2x32xf32>
    %76 = arith.addf %72, %75 : vector<2x32xf32>
    %77 = math.tanh %76 : vector<2x32xf32>
    %c7 = arith.constant 7 : index
    %c0_53 = arith.constant 0 : index
    %c0_54 = arith.constant 0 : index
    %78 = vector.load %arg4[%c7, %c0_53, %c0_54] : memref<9x32x32xf32, #tpu.memory_space<vmem>>, vector<1x32x32xf32>
    %79 = vector.shape_cast %78 : vector<1x32x32xf32> to vector<32x32xf32>
    %cst_55 = arith.constant dense<0.000000e+00> : vector<2x32xf32>
    %80 = tpu.matmul %35, %79, %cst_55 {dimension_numbers = #tpu.dot_dimension_numbers<[1], [0], [0], [1], [0, 0, 1, 1], [], []>} : vector<2x32xf32>, vector<32x32xf32>, vector<2x32xf32> -> vector<2x32xf32>
    %c7_56 = arith.constant 7 : index
    %c0_57 = arith.constant 0 : index
    %c0_58 = arith.constant 0 : index
    %81 = vector.load %arg5[%c7_56, %c0_57, %c0_58] : memref<9x1x32xf32, #tpu.memory_space<vmem>>, vector<1x1x32xf32>
    %82 = vector.shape_cast %81 : vector<1x1x32xf32> to vector<1x32xf32>
    %83 = vector.broadcast %82 : vector<1x32xf32> to vector<2x32xf32>
    %84 = arith.addf %80, %83 : vector<2x32xf32>
    %85 = math.tanh %84 : vector<2x32xf32>
    %c8 = arith.constant 8 : index
    %c0_59 = arith.constant 0 : index
    %c0_60 = arith.constant 0 : index
    %86 = vector.load %arg4[%c8, %c0_59, %c0_60] : memref<9x32x32xf32, #tpu.memory_space<vmem>>, vector<1x32x32xf32>
    %87 = vector.shape_cast %86 : vector<1x32x32xf32> to vector<32x32xf32>
    %cst_61 = arith.constant dense<0.000000e+00> : vector<2x32xf32>
    %88 = tpu.matmul %85, %87, %cst_61 {dimension_numbers = #tpu.dot_dimension_numbers<[1], [0], [0], [1], [0, 0, 1, 1], [], []>} : vector<2x32xf32>, vector<32x32xf32>, vector<2x32xf32> -> vector<2x32xf32>
    %c8_62 = arith.constant 8 : index
    %c0_63 = arith.constant 0 : index
    %c0_64 = arith.constant 0 : index
    %89 = vector.load %arg5[%c8_62, %c0_63, %c0_64] : memref<9x1x32xf32, #tpu.memory_space<vmem>>, vector<1x1x32xf32>
    %90 = vector.shape_cast %89 : vector<1x1x32xf32> to vector<1x32xf32>
    %91 = vector.broadcast %90 : vector<1x32xf32> to vector<2x32xf32>
    %92 = arith.addf %88, %91 : vector<2x32xf32>
    %93 = math.tanh %92 : vector<2x32xf32>
    %94 = vector.extract_strided_slice %93 {offsets = [0, 0], sizes = [2, 16], strides = [1, 1]} : vector<2x32xf32> to vector<2x16xf32>
    %c4_65 = arith.constant 4 : index
    %95 = memref.load %arg3[%c4_65] : memref<8xf32, #tpu.memory_space<smem>>
    %c5_66 = arith.constant 5 : index
    %96 = memref.load %arg3[%c5_66] : memref<8xf32, #tpu.memory_space<smem>>
    %cst_67 = arith.constant dense<0.000000e+00> : vector<2x16xf32>
    %97 = tpu.matmul %94, %0, %cst_67 {dimension_numbers = #tpu.dot_dimension_numbers<[1], [0], [0], [1], [0, 0, 1, 1], [], []>} : vector<2x16xf32>, vector<16x16xf32>, vector<2x16xf32> -> vector<2x16xf32>
    %98 = vector.broadcast %95 : f32 to vector<2x16xf32>
    %99 = arith.mulf %97, %98 : vector<2x16xf32>
    %100 = vector.broadcast %96 : f32 to vector<2x16xf32>
    %101 = arith.addf %99, %100 : vector<2x16xf32>
    %102 = math.tanh %101 : vector<2x16xf32>
    %103 = arith.addf %102, %94 : vector<2x16xf32>
    %c6_68 = arith.constant 6 : index
    %104 = memref.load %arg3[%c6_68] : memref<8xf32, #tpu.memory_space<smem>>
    %c7_69 = arith.constant 7 : index
    %105 = memref.load %arg3[%c7_69] : memref<8xf32, #tpu.memory_space<smem>>
    %cst_70 = arith.constant dense<0.000000e+00> : vector<2x16xf32>
    %106 = tpu.matmul %103, %0, %cst_70 {dimension_numbers = #tpu.dot_dimension_numbers<[1], [0], [0], [1], [0, 0, 1, 1], [], []>} : vector<2x16xf32>, vector<16x16xf32>, vector<2x16xf32> -> vector<2x16xf32>
    %107 = vector.broadcast %104 : f32 to vector<2x16xf32>
    %108 = arith.mulf %106, %107 : vector<2x16xf32>
    %109 = vector.broadcast %105 : f32 to vector<2x16xf32>
    %110 = arith.addf %108, %109 : vector<2x16xf32>
    %111 = vector.extract_strided_slice %35 {offsets = [0, 0], sizes = [2, 8], strides = [1, 1]} : vector<2x32xf32> to vector<2x8xf32>
    %112 = vector.extract_strided_slice %77 {offsets = [0, 0], sizes = [2, 8], strides = [1, 1]} : vector<2x32xf32> to vector<2x8xf32>
    %113 = tpu.concatenate %110, %111, %112 in 1 : vector<2x16xf32>, vector<2x8xf32>, vector<2x8xf32> -> vector<2x32xf32>
    %c0_71 = arith.constant 0 : index
    %c0_72 = arith.constant 0 : index
    %114 = vector.load %arg6[%c0_71, %c0_72] : memref<2x32xf32, #tpu.memory_space<vmem>>, vector<2x32xf32>
    tpu.vector_store %arg6[%c0_71, %c0_72], %113 {strides = array<i32>} : memref<2x32xf32, #tpu.memory_space<vmem>>, vector<2x32xf32>,
    return
  }
}

</mosaic_0001>

<bundles_post_ra>
// kernel: net_forward.1
= control target key start
LH: loop header
LB: loop body
LE: loop exit
PB: predicated region body
PF: predicated region fallthrough
CT: control target
= control target key end

     0   :  { %11 = vsyncpa [#allocation4], 0  ;;  %s1675_s0 = inlined_call_operand.vmem [shape: f32[16,16], index: 0, kind: input, shape index: {}]   ;;  %s1676_s1 = inlined_call_operand.vmem [shape: f32[2,16], index: 1, kind: input, shape index: {}]   ;;  %s1677_s2 = inlined_call_operand.vmem [shape: f32[2,2], index: 2, kind: input, shape index: {}]   ;;  %s1678_s3 = inlined_call_operand.vmem [shape: f32[8], index: 3, kind: input, shape index: {}]   ;;  %s1679_s4 = inlined_call_operand.hbm [shape: f32[9,32,32], index: 4, kind: input, shape index: {}]   ;;  %s1680_s5 = inlined_call_operand.vmem [shape: f32[9,1,32], index: 5, kind: input, shape index: {}]   ;;  %s1681_s6 = inlined_call_operand.vmem [shape: f32[2,32], index: 6, kind: output, shape index: {}]  }
   0x1   :  { %s25_s23 = sshll.u32 %s1678_s3, 4  ;;  %s26_s23 = int_to_ptr.vmem [resolvable:$true] %s25_s23 }
   0x2   :  { %12 = vsyncpa [#allocation3], 0  ;;  %s1471_s24 = scalar_lea.vmem %s26_s23, 16  ;;  %p1476_p1 = scmp.lt.s32.totalorder %s26_s23, %s26_s23 }
   0x3   :  { %p1472_p0 = scmp.ne.s32.totalorder %s26_s23, %s1471_s24  ;;  %p1477_p2 = scmp.lt.s32.totalorder %s1471_s24, %s1471_s24 }
   0x5   :  { %p1478_p3 = por %p1477_p2, %p1476_p1 }
   0x7   :  { %p1479_p4 = pnand %p1478_p3, %p1472_p0 }
   0x9   :  { %1482 = shalt.err (!%p1479_p4)
}
   0xa   :  { %s1509_s25 = smov [#allocation2]   ;;  %s1510_s26 = smov [#allocation5]  }
   0xb   :  { %28 = dma.vmem_to_smem %s26_s23, 16, %s1509_s25, [#allocation4]  }
   0xc   :  { %s34_s27 = sshll.u32 %s1510_s26, 4  ;;  %s1483_s30 = scalar_lea.hbm %s1679_s4, 4608  ;;  %s35_s27 = int_to_ptr.vmem [resolvable:$true] %s34_s27 }
   0xd   :  { %p1484_p5 = scmp.ne.s32.totalorder %s1679_s4, %s1483_s30  ;;  %p1487_p6 = scmp.lt.u32.totalorder %s1483_s30, %s1679_s4 }
   0xf   :  { %p1489_p7 = pnand %p1487_p6, %p1484_p5 }
  0x11   :  { %1492 = shalt.err (!%p1489_p7)
}
  0x12   :  { %s1493_s10 = scalar_lea.vmem %s35_s27, 4608  ;;  %p1498_p9 = scmp.lt.s32.totalorder %s35_s27, %s35_s27 }
  0x13   :  { %p1494_p8 = scmp.ne.s32.totalorder %s35_s27, %s1493_s10  ;;  %p1499_p10 = scmp.lt.s32.totalorder %s1493_s10, %s1493_s10 }
  0x15   :  { %p1500_p11 = por %p1499_p10, %p1498_p9 }
  0x17   :  { %p1501_p12 = pnand %p1500_p11, %p1494_p8 }
  0x19   :  { %1504 = shalt.err (!%p1501_p12)
}
  0x1a   :  { %s1511_s11 = smov 128   ;;  %s1512_s12 = smov 8  }
  0x1b   :  { %40 = dma.hbm_to_vmem [thread:$0]  %s1679_s4, 4608, %s35_s27, [#allocation3], %s1511_s11, %s1511_s11, %s1512_s12  }
  0x1c   :  { %1505 = dma.done.wait [#allocation4], 16  }
  0x1d   :  { %1506 = vsyncadd [#allocation4], 4294967280 }
  0x1e   :  { %1507 = dma.done.wait [#allocation3], 4608  }
  0x1f   :  { %1508 = vsyncadd [#allocation3], 4294962688 }
  0x20   :  { %49 = sfence }
  0x21   :  { %v50_v0 = vld [vmem:[%s1675_s0] sm:$0xff]  ;;  %v51_v1 = vld [vmem:[%s1675_s0 + $0x8] sm:$0xff]  ;;  %v1513_v2 = vmov 0.0|0.0   ;;  %vm1514_vm0 = vmmov 0   ;;  %v1515_v4 = vmov 0.0   ;;  %vm55_vm1 = vcmask 130048  }
  0x22   :  { %1383 = vmatprep.subr.bf16.mxu0 %v1513_v2  ;;  %v1575_v3 = vpack.c.bf16 %v51_v1, %v50_v0  ;;  %1270 = vmatprep.mubr.msk.f32.mxu0 %vm1514_vm0, %v1515_v4  ;;  %v52_v5 = vld [vmem:[%s1676_s1] sm:$0x3]  ;;  %s53_s0 = sld [smem:[#allocation2]]  ;;  %s1176_s20 = sld [smem:[#allocation2 + $0x1]]  ;;  %v218_v15 = vld [vmem:[#allocation5 + $0xa8] sm:$0xff]  ;;  %vm401_vm2 = vcmask 1041408  }
  0x23   :  { %1386 = vmatprep.subr.bf16.mxu1 %v1513_v2  ;;  %1277 = vmatprep.mubr.msk.f32.mxu1 %vm1514_vm0, %v1515_v4  ;;  %v217_v14 = vld [vmem:[#allocation5 + $0xa0] sm:$0xff]  ;;  %s1178_s1 = sld [smem:[#allocation2 + $0x2]]  ;;  %s1179_s21 = sld [smem:[#allocation2 + $0x3]]  ;;  %vm397_vm3 = vcmask 15360   ;;  %v303_v28 = vld [vmem:[#allocation5 + $0xc8] sm:$0xff]  ;;  %v304_v30 = vld [vmem:[#allocation5 + $0xd0] sm:$0xff] }
  0x24   :  { %1385 = vmatpush3.bf16.msra.mxu0 %v1575_v3  ;;  %1388 = vmatpush3.bf16.msra.mxu1 %v1575_v3  ;;  %v1390_v16 = vpack.c.bf16 %v218_v15, %v217_v14  ;;  %v389_v25 = vld [vmem:[#allocation5] sm:$0xff]  ;;  %v305_v31 = vld [vmem:[#allocation5 + $0xd8] sm:$0xff]  ;;  %v478_v34 = vld [vmem:[#allocation5 + $0x28] sm:$0xff]  ;;  %vm314_vm4 = vcmask 261120   ;;  %s1516_s7 = smov 16   ;;  %s1517_s17 = smov 24  }
  0x25   :  { %1389 = vmatprep.subr.bf16.mxu0 %v1513_v2  ;;  %1392 = vmatprep.subr.bf16.mxu1 %v1513_v2  ;;  %v388_v26 = vld [vmem:[%s1677_s2] sm:$0x3]  ;;  %v1396_v33 = vpack.c.bf16 %v305_v31, %v304_v30  ;;  %v479_v36 = vld [vmem:[#allocation5 + $0x30] sm:$0xff]  ;;  %v480_v37 = vld [vmem:[#allocation5 + $0x38] sm:$0xff]  ;;  %s1208_s18 = sld [smem:[#allocation2 + $0x4]]  ;;  %s1209_s4 = sld [smem:[#allocation2 + $0x5]] }
  0x26   :  { %v302_v27 = vld [vmem:[#allocation5 + $0xc0] sm:$0xff]  ;;  %v1402_v38 = vpack.c.bf16 %v480_v37, %v479_v36  ;;  %v565_v50 = vld [vmem:[#allocation5 + $0x48] sm:$0xff]  ;;  %v566_v51 = vld [vmem:[#allocation5 + $0x50] sm:$0xff]  ;;  %s1212_s19 = sld [smem:[#allocation2 + $0x7]]  ;;  %vm1166_vm5 = vcmask 195584   ;;  %vm1168_vm6 = vcmask 254976  }
  0x27   :  { %1271 = vmatmul.mubr.msk.f32.vlgmr.msra.gmra.mrb[0].mxu0 %vm55_vm1, %v52_v5  ;;  %v1393_v29 = vpack.c.bf16 %v303_v28, %v302_v27  ;;  %v477_v32 = vld [vmem:[#allocation5 + $0x20] sm:$0xff]  ;;  %v567_v53 = vld [vmem:[#allocation5 + $0x58] sm:$0xff]  ;;  %v652_v1 = vld [vmem:[#allocation5 + $0x68] sm:$0xff] }
  0x28   :  { %1284 = vmatprep.mubr.msk.f32.mxu0 %vm1514_vm0, %v1515_v4  ;;  %v129_v6 = vstv %s53_s0  ;;  %v131_v8 = vstv %s1176_s20  ;;  %1391 = vmatpush3.bf16.msra.mxu0 %v1390_v16  ;;  %v1399_v35 = vpack.c.bf16 %v478_v34, %v477_v32  ;;  %v1182_v39 = vld [vmem:[%s1680_s5 + $0x5] ss:$0 sm:$0xff]  ;;  %v1187_v43 = vld [vmem:[%s1680_s5] ss:$0 sm:$0xff]  ;;  %v1408_v54 = vpack.c.bf16 %v567_v53, %v566_v51  ;;  %v826_v14 = vld [vmem:[#allocation5 + $0xe8] sm:$0xff] }
  0x29   :  { %1298 = vmatprep.subr.mxu0 %v1515_v4  ;;  %v210_v17 = vstv %s1178_s1  ;;  %v212_v19 = vstv %s1179_s21  ;;  %v564_v49 = vld [vmem:[#allocation5 + $0x40] sm:$0xff]  ;;  %v827_v16 = vld [vmem:[#allocation5 + $0xf0] sm:$0xff] }
  0x2a   :  { %v1405_v52 = vpack.c.bf16 %v565_v50, %v564_v49  ;;  %v1185_v55 = vld [vmem:[%s1680_s5 + $0x6] ss:$0 sm:$0xff]  ;;  %v1191_v59 = vld [vmem:[%s1680_s5 + $0x1] ss:$0 sm:$0xff]  ;;  %v1203_v30 = vld [vmem:[%s1680_s5 + $0x7] ss:$0 sm:$0xff] }
  0x2b   :  { %v651_v0 = vld [vmem:[#allocation5 + $0x60] sm:$0xff]  ;;  %v914_v37 = vld [vmem:[#allocation5 + $0x110] sm:$0xff]  ;;  %v1073_v49 = vstv %s1208_s18  ;;  %v1075_v51 = vstv %s1209_s4 }
  0x2c   :  { %v912_v32 = vld [vmem:[#allocation5 + $0x100] sm:$0xff] }
  0xfa   :  { %v125_v7 = vpop.f32.mrb[0].mxu0 }
  0xfb   :  { %v130_v9 = vmul.f32 %v129_v6, %v125_v7  ;;  %v1272_v10 = vpop.f32.mrb[1].mxu0  ;;  %v1411_v6 = vpack.c.bf16 %v652_v1, %v651_v0  ;;  %v654_v7 = vld [vmem:[#allocation5 + $0x78] sm:$0xff] }
  0xfd   :  { %v132_v11 = vadd.f32 %v131_v8, %v130_v9  ;;  %v1194_v9 = vld [vmem:[%s1680_s5 + $0x2] ss:$0 sm:$0xff] }
  0xff   :  { %1449 = vtanh.f32 %v132_v11 }
 0x109   :  { %v1450_v12 = vpop.eup %1449 }
 0x10a   :  { %v134_v13 = vadd.f32 %v1450_v12, %v52_v5  ;;  %v653_v5 = vld [vmem:[#allocation5 + $0x70] sm:$0xff] }
 0x10b   :  { %v1414_v8 = vpack.c.bf16 %v654_v7, %v653_v5 }
 0x10c   :  { %1278 = vmatmul.mubr.msk.f32.vlgmr.msra.gmra.mrb[0].mxu1 %vm55_vm1, %v134_v13 }
 0x10d   :  { %1295 = vmatprep.mubr.msk.f32.mxu1 %vm1514_vm0, %v1515_v4  ;;  %1394 = vmatpush3.bf16.msra.mxu1 %v1393_v29 }
 0x10e   :  { %1395 = vmatprep.subr.bf16.mxu1 %v1513_v2 }
 0x111   :  { %1397 = vmatpush3.bf16.msra.mxu1 %v1396_v33  ;;  %v913_v33 = vld [vmem:[#allocation5 + $0x108] sm:$0xff] }
 0x112   :  { %1404 = vmatprep.subr.bf16.mxu1 %v1513_v2  ;;  %v1429_v36 = vpack.c.bf16 %v913_v33, %v912_v32 }
 0x1df   :  { %v206_v18 = vpop.f32.mrb[0].mxu1 }
 0x1e0   :  { %v211_v20 = vmul.f32 %v210_v17, %v206_v18  ;;  %v1279_v21 = vpop.f32.mrb[1].mxu1  ;;  %v828_v17 = vld [vmem:[#allocation5 + $0xf8] sm:$0xff] }
 0x1e1   :  { %v739_v21 = vld [vmem:[#allocation5 + $0x88] sm:$0xff] }
 0x1e2   :  { %v213_v22 = vadd.f32 %v212_v19, %v211_v20  ;;  %v1426_v19 = vpack.c.bf16 %v828_v17, %v827_v16  ;;  %v738_v20 = vld [vmem:[#allocation5 + $0x80] sm:$0xff] }
 0x1e4   :  { %1451 = vtanh.f32 %v213_v22  ;;  %v1417_v22 = vpack.c.bf16 %v739_v21, %v738_v20 }
 0x1ee   :  { %v1452_v23 = vpop.eup %1451 }
 0x1ef   :  { %v215_v24 = vadd.f32 %v1452_v23, %v134_v13  ;;  %v825_v13 = vld [vmem:[#allocation5 + $0xe0] sm:$0xff]  ;;  %v740_v23 = vld [vmem:[#allocation5 + $0x90] sm:$0xff] }
 0x1f0   :  { %v1423_v15 = vpack.c.bf16 %v826_v14, %v825_v13 }
 0x1f1   :  { %1285 = vmatmul.mubr.msk.f32.vlgmr.msra.gmra.mrb[2].mxu0 %vm55_vm1, %v215_v24  ;;  %v741_v24 = vld [vmem:[#allocation5 + $0x98] sm:$0xff] }
 0x1f2   :  { %1299 = vmatpush3.msk.msra.mxu0 %vm401_vm2, %v389_v25  ;;  %1300 = vmatprep.mubr.msk.f32.mxu0 %vm1514_vm0, %v1515_v4  ;;  %v1420_v25 = vpack.c.bf16 %v741_v24, %v740_v23 }
 0x1f3   :  { %1398 = vmatprep.subr.bf16.mxu0 %v1513_v2 }
 0x1f5   :  { %1301 = vmatmul.mubr.msk.f32.vlgmr.msra.gmra.mrb[4].mxu0 %vm397_vm3, %v388_v26  ;;  %v1197_v26 = vld [vmem:[%s1680_s5 + $0x3] ss:$0 sm:$0xff] }
 0x1f6   :  { %1311 = vmatprep.mubr.msk.f32.mxu0 %vm1514_vm0, %v1515_v4  ;;  %1400 = vmatpush3.bf16.msra.mxu0 %v1399_v35 }
 0x1f7   :  { %1401 = vmatprep.subr.bf16.mxu0 %v1513_v2 }
 0x1fa   :  { %1403 = vmatpush3.bf16.msra.mxu0 %v1402_v38  ;;  %v915_v38 = vld [vmem:[#allocation5 + $0x118] sm:$0xff] }
 0x1fb   :  { %1410 = vmatprep.subr.bf16.mxu0 %v1513_v2 }
 0x2c4   :  { %v296_v40 = vpop.f32.mrb[2].mxu0 }
 0x2c5   :  { %v297_v41 = vadd.f32 %v1182_v39, %v296_v40  ;;  %v1286_v42 = vpop.f32.mrb[3].mxu0  ;;  %v1432_v40 = vpack.c.bf16 %v915_v38, %v914_v37 }
 0x2c6   :  { %v1200_v42 = vld [vmem:[%s1680_s5 + $0x4] ss:$0 sm:$0xff] }
 0x2c7   :  { %1453 = vtanh.f32 %v297_v41 }
 0x2c8   :  { %v471_v44 = vpop.f32.mrb[4].mxu0 }
 0x2c9   :  { %v472_v45 = vadd.f32 %v1187_v43, %v471_v44  ;;  %v1302_v46 = vpop.f32.mrb[5].mxu0 }
 0x2cb   :  { %1455 = vtanh.f32 %v472_v45 }
 0x2d1   :  { %v1454_v47 = vpop.eup %1453 }
 0x2d2   :  { %1296 = vmatmul.mubr.msk.f32.vlgmr.msra.gmra.mrb[2].mxu1 %vm314_vm4, %v1454_v47 }
 0x2d3   :  { %1322 = vmatprep.mubr.msk.f32.mxu1 %vm1514_vm0, %v1515_v4  ;;  %1406 = vmatpush3.bf16.msra.mxu1 %v1405_v52 }
 0x2d4   :  { %1407 = vmatprep.subr.bf16.mxu1 %v1513_v2 }
 0x2d5   :  { %v1456_v48 = vpop.eup %1455 }
 0x2d6   :  { %1312 = vmatmul.mubr.msk.f32.vlgmr.msra.gmra.mrb[6].mxu0 %vm314_vm4, %v1456_v48 }
 0x2d7   :  { %1333 = vmatprep.mubr.msk.f32.mxu0 %vm1514_vm0, %v1515_v4  ;;  %1409 = vmatpush3.bf16.msra.mxu1 %v1408_v54 }
 0x2d8   :  { %1416 = vmatprep.subr.bf16.mxu1 %v1513_v2  ;;  %1412 = vmatpush3.bf16.msra.mxu0 %v1411_v6 }
 0x2d9   :  { %1413 = vmatprep.subr.bf16.mxu0 %v1513_v2 }
 0x2dc   :  { %1415 = vmatpush3.bf16.msra.mxu0 %v1414_v8 }
 0x2dd   :  { %1422 = vmatprep.subr.bf16.mxu0 %v1513_v2 }
 0x3a5   :  { %v384_v56 = vpop.f32.mrb[2].mxu1 }
 0x3a6   :  { %v385_v57 = vadd.f32 %v1185_v55, %v384_v56  ;;  %v1297_v58 = vpop.f32.mrb[3].mxu1 }
 0x3a8   :  { %1158 = vrot.lane.b32.xlu0 %v385_v57, %s1516_s7 }
 0x3a9   :  { %v558_v60 = vpop.f32.mrb[6].mxu0 }
 0x3aa   :  { %v559_v61 = vadd.f32 %v1191_v59, %v558_v60  ;;  %v1313_v62 = vpop.f32.mrb[7].mxu0  ;;  %v1156_v59 = vstv %s1212_s19 }
 0x3ac   :  { %1457 = vtanh.f32 %v559_v61 }
 0x3b6   :  { %v1458_v63 = vpop.eup %1457 }
 0x3b7   :  { %1323 = vmatmul.mubr.msk.f32.vlgmr.msra.gmra.mrb[4].mxu1 %vm314_vm4, %v1458_v63 }
 0x3b8   :  { %1344 = vmatprep.mubr.msk.f32.mxu1 %vm1514_vm0, %v1515_v4  ;;  %1418 = vmatpush3.bf16.msra.mxu1 %v1417_v22 }
 0x3b9   :  { %1419 = vmatprep.subr.bf16.mxu1 %v1513_v2 }
 0x3bc   :  { %1421 = vmatpush3.bf16.msra.mxu1 %v1420_v25 }
 0x3bd   :  { %1428 = vmatprep.subr.bf16.mxu1 %v1513_v2 }
 0x41a   :  { %v1159_v60 = vpop.permute.xlu0 %1158 }
 0x48a   :  { %v645_v10 = vpop.f32.mrb[4].mxu1 }
 0x48b   :  { %v646_v11 = vadd.f32 %v1194_v9, %v645_v10  ;;  %v1324_v12 = vpop.f32.mrb[5].mxu1 }
 0x48d   :  { %1459 = vtanh.f32 %v646_v11 }
 0x497   :  { %v1460_v18 = vpop.eup %1459 }
 0x498   :  { %1334 = vmatmul.mubr.msk.f32.vlgmr.msra.gmra.mrb[8].mxu0 %vm314_vm4, %v1460_v18 }
 0x499   :  { %1424 = vmatpush3.bf16.msra.mxu0 %v1423_v15  ;;  %1355 = vmatprep.mubr.msk.f32.mxu0 %vm1514_vm0, %v1515_v4 }
 0x49a   :  { %1425 = vmatprep.subr.bf16.mxu0 %v1513_v2 }
 0x49d   :  { %1427 = vmatpush3.bf16.msra.mxu0 %v1426_v19 }
 0x49e   :  { %1434 = vmatprep.subr.bf16.mxu0 %v1513_v2 }
 0x4a0   :  { %1356 = vmatmul.mubr.msk.f32.vlgmr.msra.gmra.mrb[10].mxu0 %vm314_vm4, %v385_v57 }
 0x4a1   :  { %1436 = vmatpush3.bf16.msra.mxu0 %v1575_v3  ;;  %1373 = vmatprep.mubr.msk.f32.mxu0 %vm1514_vm0, %v1515_v4 }
 0x56b   :  { %v732_v27 = vpop.f32.mrb[8].mxu0 }
 0x56c   :  { %v733_v28 = vadd.f32 %v1197_v26, %v732_v27  ;;  %v1335_v29 = vpop.f32.mrb[9].mxu0 }
 0x56e   :  { %1461 = vtanh.f32 %v733_v28 }
 0x573   :  { %v906_v31 = vpop.f32.mrb[10].mxu0 }
 0x574   :  { %v907_v34 = vadd.f32 %v1203_v30, %v906_v31  ;;  %v1357_v35 = vpop.f32.mrb[11].mxu0 }
 0x576   :  { %1463 = vtanh.f32 %v907_v34 }
 0x578   :  { %v1462_v39 = vpop.eup %1461 }
 0x579   :  { %1345 = vmatmul.mubr.msk.f32.vlgmr.msra.gmra.mrb[6].mxu1 %vm314_vm4, %v1462_v39 }
 0x57a   :  { %1430 = vmatpush3.bf16.msra.mxu1 %v1429_v36  ;;  %1366 = vmatprep.mubr.msk.f32.mxu1 %vm1514_vm0, %v1515_v4 }
 0x57b   :  { %1431 = vmatprep.subr.bf16.mxu1 %v1513_v2 }
 0x57e   :  { %1433 = vmatpush3.bf16.msra.mxu1 %v1432_v40 }
 0x57f   :  { %1437 = vmatprep.subr.bf16.mxu1 %v1513_v2  ;;  %v1206_v2 = vld [vmem:[%s1680_s5 + $0x8] ss:$0 sm:$0xff]  ;;  %s1211_s5 = sld [smem:[#allocation2 + $0x6]] }
 0x580   :  { %v1464_v41 = vpop.eup %1463 }
 0x581   :  { %1367 = vmatmul.mubr.msk.f32.vlgmr.msra.gmra.mrb[8].mxu1 %vm314_vm4, %v1464_v41 }
 0x582   :  { %1439 = vmatpush3.bf16.msra.mxu1 %v1575_v3  ;;  %1380 = vmatprep.mubr.msk.f32.mxu1 %vm1514_vm0, %v1515_v4 }
 0x585   :  { %v1154_v57 = vstv %s1211_s5 }
 0x64c   :  { %v819_v43 = vpop.f32.mrb[6].mxu1 }
 0x64d   :  { %v820_v44 = vadd.f32 %v1200_v42, %v819_v43  ;;  %v1346_v45 = vpop.f32.mrb[7].mxu1 }
 0x64f   :  { %1465 = vtanh.f32 %v820_v44 }
 0x654   :  { %v993_v46 = vpop.f32.mrb[8].mxu1 }
 0x655   :  { %v994_v47 = vadd.f32 %v1206_v2, %v993_v46  ;;  %v1368_v48 = vpop.f32.mrb[9].mxu1 }
 0x657   :  { %1467 = vtanh.f32 %v994_v47 }
 0x659   :  { %v1466_v3 = vpop.eup %1465 }
 0x65a   :  { %1162 = vrot.lane.b32.xlu0 %v1466_v3, %s1517_s17 }
 0x661   :  { %v1468_v4 = vpop.eup %1467 }
 0x662   :  { %1374 = vmatmul.mubr.msk.f32.vlgmr.msra.gmra.mrb[12].mxu0 %vm55_vm1, %v1468_v4 }
 0x6cc   :  { %v1163_v0 = vpop.permute.xlu0 %1162 }
 0x735   :  { %v1069_v50 = vpop.f32.mrb[12].mxu0 }
 0x736   :  { %v1074_v52 = vmul.f32 %v1073_v49, %v1069_v50  ;;  %v1375_v53 = vpop.f32.mrb[13].mxu0 }
 0x738   :  { %v1076_v54 = vadd.f32 %v1075_v51, %v1074_v52 }
 0x73a   :  { %1469 = vtanh.f32 %v1076_v54 }
 0x744   :  { %v1470_v55 = vpop.eup %1469 }
 0x745   :  { %v1078_v56 = vadd.f32 %v1470_v55, %v1468_v4 }
 0x747   :  { %1381 = vmatmul.mubr.msk.f32.vlgmr.msra.gmra.mrb[10].mxu1 %vm55_vm1, %v1078_v56 }
 0x81a   :  { %v1150_v58 = vpop.f32.mrb[10].mxu1 }
 0x81b   :  { %v1155_v61 = vmul.f32 %v1154_v57, %v1150_v58  ;;  %v1382_v62 = vpop.f32.mrb[11].mxu1 }
 0x81d   :  { %v1157_v63 = vadd.f32 %v1156_v59, %v1155_v61 }
 0x81f   :  { %v1165_v1 = vsel %vm55_vm1, %v1157_v63, %v1159_v60 }
 0x820   :  { %v1167_v5 = vsel %vm1166_vm5, %v1165_v1, %v1163_v0 }
 0x821   :  { %1169 = vst.msk [vmem:[%s1681_s6] sm:$0x3] %vm1168_vm6, %v1167_v5 }
 0x822   :  { %1174 = vsyncpa [#allocation3], 1 }
 0x823   :  { %1175 = vsyncpa [#allocation4], 1 }

</bundles_post_ra>
